<compile_context>
chip_gen: v6e
topology: v6e:2x2x1
jax: 0.10.0
libtpu: 0.0.40
codegen_flags: <defaults>
</compile_context>

<pallas_src>
import jax
import jax.numpy as jnp
import numpy as np
from jax import lax
from jax.experimental import pallas as pl
from jax.experimental.pallas import tpu as pltpu

PLANES = 4
KH, KW = 7, 4          # c2 kernel_size
PH, PW = 3, 1          # c2 padding
EPS = 1e-5
LANE = 128             # TPU lane width


def _fold_bn(gamma, beta, mean, var, eps=EPS):
    scale = gamma / jnp.sqrt(var + eps)
    shift = beta - mean * scale
    return (scale.reshape(1, -1).astype(jnp.float32),
            shift.reshape(1, -1).astype(jnp.float32))


def _round_up(x, m):
    return ((x + m - 1) // m) * m


def _block_diag(w, reps):
    """(a, b) -> block-diagonal (reps*a, reps*b): a 1x1 conv in (W*C) lane form."""
    a, b = w.shape
    eye = jnp.eye(reps, dtype=w.dtype)
    return jnp.einsum('rs,ab->rasb', eye, w).reshape(reps * a, reps * b)


def _prepare_operands(params, h, w):
    """Host-side weight prep: fold BN scales into the conv weights and build
    the lane-flattened matmul operands (glue only, done once)."""
    (w1, s1, b1, w2, s2, b2, w3, s3, b3, wd, sd, bd) = params
    c = w1.shape[0]
    c2 = w2.shape[-1]
    wo = w + 2 * PW - KW + 1
    wc = w * c
    kstride = _round_up(wc, LANE)            # 128-aligned per-kh block stride

    # Stage 1: 1x1 conv + bn1 -> lane block-diagonal matmul weight.
    W1 = _block_diag(w1 * s1, w)                               # (w*c, w*c)
    B1 = jnp.tile(b1, (1, w))                                  # (1, w*c)

    # Stage 2: (7,4) conv + bn2 -> block-Toeplitz weight.  W-padding is folded
    # into the weight; per-kh blocks are padded to a 128-lane stride so the
    # in-kernel operand stores land on lane-tile boundaries.
    w2s = w2 * s2.reshape(1, 1, 1, c2)                         # fold bn2 scale
    sel = (jnp.arange(w)[None, :, None] + PW ==
           jnp.arange(wo)[None, None, :] + jnp.arange(KW)[:, None, None])
    blocks = jnp.einsum('auj,haio->huijo', sel.astype(w2.dtype), w2s)
    blocks = blocks.reshape(KH, wc, wo * c2)
    blocks = jnp.pad(blocks, ((0, 0), (0, kstride - wc), (0, 0)))
    W2 = blocks.reshape(KH * kstride, wo * c2)                 # (KH*128, wo*c2)
    B2 = jnp.tile(b2, (1, wo))                                 # (1, wo*c2)

    # Stage 3: c3(1x1)+bn3 merged with downsample(1x1)+bn along K; the
    # identity block starts at a 128-aligned row offset.
    W3 = _block_diag(w3 * s3, wo)                              # (wo*c2, wo*c4)
    Wd = _block_diag(wd * sd, wo)                              # (wo*c,  wo*c4)
    k3 = _round_up(wo * c2, LANE)
    W34 = jnp.concatenate(
        [jnp.pad(W3, ((0, k3 - wo * c2), (0, 0))), Wd], axis=0)  # (k3+wo*c, wo*c4)
    B34 = jnp.tile(b3 + bd, (1, wo))                           # (1, wo*c4)
    return W1, B1, W2, B2, W34, B34


# ----------------------- single fused residual-block kernel ------------------
def _residual_block_kernel(x_ref, w1_ref, b1_ref, w2_ref, b2_ref,
                           w34_ref, b34_ref, o_ref, x2_ref, x3_ref):
    h, wc = x_ref.shape                          # (H, W*C)
    ho = o_ref.shape[0]                          # output height (== H here)
    kstride = x2_ref.shape[1] // KH              # 128-aligned per-kh stride
    woc2 = w2_ref.shape[1]                       # WO * C2
    k3 = _round_up(woc2, LANE)                   # offset of the identity block
    woc = w34_ref.shape[0] - k3                  # WO * C

    x = x_ref[...]

    # Stage 1: c1 (1x1) + bn1 + relu  (bn scale folded into w1 host-side).
    h1 = jnp.dot(x, w1_ref[...], preferred_element_type=jnp.float32) + b1_ref[...]
    h1 = jnp.maximum(h1, 0.0)                    # (H, W*C)

    # Stage 2: (7,4) conv + bn2 + relu as ONE matmul.  Stack the KH row-shifted
    # copies of h1; zero rows realize the H padding, W padding lives in w2_ref.
    x2_ref[...] = jnp.zeros_like(x2_ref)
    for kh in range(KH):                         # static unroll: 7 aligned stores
        shift = kh - PH
        lo, hi = max(0, -shift), min(ho, h - shift)
        x2_ref[lo:hi, kh * kstride:kh * kstride + wc] = h1[lo + shift:hi + shift, :]
    h2 = jnp.dot(x2_ref[...], w2_ref[...],
                 preferred_element_type=jnp.float32) + b2_ref[...]
    h2 = jnp.maximum(h2, 0.0)                    # (HO, WO*C2)

    # Stage 3: c3(1x1)+bn3 and downsample(1x1)+bn merged into one concat-K
    # matmul (which also performs the residual add), then relu.
    # TODO(synk): PyTorch's `out += identity` would raise since the (7,4)/(3,1)
    # conv shrinks W by 1; we crop identity to the first WO columns to match.
    x3_ref[...] = jnp.zeros_like(x3_ref)
    x3_ref[:, :woc2] = h2
    x3_ref[:, k3:k3 + woc] = x[:, :woc]
    out = jnp.dot(x3_ref[...], w34_ref[...],
                  preferred_element_type=jnp.float32) + b34_ref[...]
    o_ref[...] = jnp.maximum(out, 0.0)           # (HO, WO*C4) — lane-dense store


def residual_block_2d(x_nchw, params):
    n, c, h, w = x_nchw.shape
    c2, c4 = 2 * c, 4 * c
    ho = h + 2 * PH - KH + 1
    wo = w + 2 * PW - KW + 1
    assert ho == h, "height-preserving padding assumed for the residual add"

    x = jnp.transpose(x_nchw, (0, 2, 3, 1)).astype(jnp.float32)   # NHWC
    x2d = x.reshape(n, h, w * c)                                  # lanes = W*C

    W1, B1, W2, B2, W34, B34 = _prepare_operands(params, h, w)
    kstride = _round_up(w * c, LANE)
    k3 = _round_up(wo * c2, LANE)

    out = pl.pallas_call(
        _residual_block_kernel,
        out_shape=jax.ShapeDtypeStruct((n, ho, wo * c4), jnp.float32),
        grid=(n,),
        in_specs=[
            pl.BlockSpec((None, h, w * c), lambda i: (i, 0, 0)),   # x, per image
            pl.BlockSpec(W1.shape, lambda i: (0, 0)),              # W1 (resident)
            pl.BlockSpec(B1.shape, lambda i: (0, 0)),              # B1
            pl.BlockSpec(W2.shape, lambda i: (0, 0)),              # W2 (Toeplitz)
            pl.BlockSpec(B2.shape, lambda i: (0, 0)),              # B2
            pl.BlockSpec(W34.shape, lambda i: (0, 0)),             # W3|Wd merged
            pl.BlockSpec(B34.shape, lambda i: (0, 0)),             # B3+Bd
        ],
        out_specs=pl.BlockSpec((None, ho, wo * c4), lambda i: (i, 0, 0)),
        scratch_shapes=[
            pltpu.VMEM((ho, KH * kstride), jnp.float32),   # stacked conv operand
            pltpu.VMEM((ho, k3 + wo * c), jnp.float32),    # [h2 | x_crop]
        ],
        compiler_params=pltpu.CompilerParams(
            dimension_semantics=("parallel",)),
    )(x2d, W1, B1, W2, B2, W34, B34)

    out = out.reshape(n, ho, wo, c4)
    return jnp.transpose(out, (0, 3, 1, 2))                        # back to NCHW


# ---------------------------- plain-JAX reference ----------------------------
def _reference(x_nchw, params):
    (w1, s1, b1, w2, s2, b2, w3, s3, b3, wd, sd, bd) = params
    x = jnp.transpose(x_nchw, (0, 2, 3, 1)).astype(jnp.float32)
    h1 = jnp.maximum(jnp.einsum('nhwc,cd->nhwd', x, w1) * s1 + b1, 0.0)
    h2 = lax.conv_general_dilated(h1, w2, window_strides=(1, 1),
                                  padding=((PH, PH), (PW, PW)),
                                  dimension_numbers=('NHWC', 'HWIO', 'NHWC'))
    h2 = jnp.maximum(h2 * s2 + b2, 0.0)
    h3 = jnp.einsum('nhwc,cd->nhwd', h2, w3) * s3 + b3
    ident = jnp.einsum('nhwc,cd->nhwd', x, wd) * sd + bd
    ident = ident[:, :, :h3.shape[2], :]
    out = jnp.maximum(h3 + ident, 0.0)
    return jnp.transpose(out, (0, 3, 1, 2))


if __name__ == "__main__":
    key = jax.random.PRNGKey(0)
    ks = jax.random.split(key, 9)
    C, C2, C4 = PLANES, 2 * PLANES, 4 * PLANES

    def bn_params(k, cdim):
        k1, k2, k3, k4 = jax.random.split(k, 4)
        gamma = 1.0 + 0.1 * jax.random.normal(k1, (cdim,))
        beta = 0.1 * jax.random.normal(k2, (cdim,))
        mean = 0.1 * jax.random.normal(k3, (cdim,))
        var = 1.0 + 0.1 * jax.random.uniform(k4, (cdim,))
        return _fold_bn(gamma, beta, mean, var)

    # Conv weights stored channels-last: PyTorch (Cout,Cin,kh,kw) -> (kh,kw,Cin,Cout)
    # (1x1 convs reduce to (Cin, Cout) matmul weights).
    w1 = 0.3 * jax.random.normal(ks[0], (C, C), dtype=jnp.float32)
    w2 = 0.1 * jax.random.normal(ks[1], (KH, KW, C, C2), dtype=jnp.float32)
    w3 = 0.2 * jax.random.normal(ks[2], (C2, C4), dtype=jnp.float32)
    wd = 0.2 * jax.random.normal(ks[3], (C, C4), dtype=jnp.float32)
    s1, b1 = bn_params(ks[4], C)
    s2, b2 = bn_params(ks[5], C2)
    s3, b3 = bn_params(ks[6], C4)
    sd, bd = bn_params(ks[7], C4)
    params = (w1, s1, b1, w2, s2, b2, w3, s3, b3, wd, sd, bd)

    x = jax.random.normal(ks[8], (2, C, 16, 16), dtype=jnp.float32)   # NCHW

    out = jax.block_until_ready(residual_block_2d(x, params))
    ref = jax.block_until_ready(_reference(x, params))

    assert out.shape == (2, C4, 16, 15), out.shape
    np.testing.assert_allclose(np.asarray(out), np.asarray(ref), rtol=2e-3, atol=2e-3)
    print("KERNEL_OK")
</pallas_src>

<mosaic_0001>
module attributes {stable_mosaic.version = 11 : i64} {
  func.func @_residual_block_kernel(%arg0: i32, %arg1: memref<1x16x64xf32, #tpu.memory_space<vmem>>, %arg2: memref<64x64xf32, #tpu.memory_space<vmem>>, %arg3: memref<1x64xf32, #tpu.memory_space<vmem>>, %arg4: memref<896x120xf32, #tpu.memory_space<vmem>>, %arg5: memref<1x120xf32, #tpu.memory_space<vmem>>, %arg6: memref<188x240xf32, #tpu.memory_space<vmem>>, %arg7: memref<1x240xf32, #tpu.memory_space<vmem>>, %arg8: memref<1x16x240xf32, #tpu.memory_space<vmem>>, %arg9: memref<16x896xf32, #tpu.memory_space<vmem>>, %arg10: memref<16x188xf32, #tpu.memory_space<vmem>>) attributes {dimension_semantics = [#tpu.dimension_semantics<parallel>], iteration_bounds = array<i64: 2>, scalar_prefetch = 0 : i64, scratch_operands = 2 : i64, tpu.core_type = #tpu.core_type<tc>, window_params = [{transform_indices = @transform_0, window_bounds = array<i64: 1, 16, 64>}, {pipeline_mode = #tpu.pipeline_mode<synchronous>, transform_indices = @transform_1, window_bounds = array<i64: 64, 64>}, {pipeline_mode = #tpu.pipeline_mode<synchronous>, transform_indices = @transform_2, window_bounds = array<i64: 1, 64>}, {pipeline_mode = #tpu.pipeline_mode<synchronous>, transform_indices = @transform_3, window_bounds = array<i64: 896, 120>}, {pipeline_mode = #tpu.pipeline_mode<synchronous>, transform_indices = @transform_4, window_bounds = array<i64: 1, 120>}, {pipeline_mode = #tpu.pipeline_mode<synchronous>, transform_indices = @transform_5, window_bounds = array<i64: 188, 240>}, {pipeline_mode = #tpu.pipeline_mode<synchronous>, transform_indices = @transform_6, window_bounds = array<i64: 1, 240>}, {transform_indices = @transform_7, window_bounds = array<i64: 1, 16, 240>}]} {
    %c0 = arith.constant 0 : index
    %c0_0 = arith.constant 0 : index
    %c0_1 = arith.constant 0 : index
    %0 = vector.load %arg1[%c0, %c0_0, %c0_1] : memref<1x16x64xf32, #tpu.memory_space<vmem>>, vector<1x16x64xf32>
    %1 = vector.shape_cast %0 : vector<1x16x64xf32> to vector<16x64xf32>
    %c0_2 = arith.constant 0 : index
    %c0_3 = arith.constant 0 : index
    %2 = vector.load %arg2[%c0_2, %c0_3] : memref<64x64xf32, #tpu.memory_space<vmem>>, vector<64x64xf32>
    %cst = arith.constant dense<0.000000e+00> : vector<16x64xf32>
    %3 = tpu.matmul %1, %2, %cst {dimension_numbers = #tpu.dot_dimension_numbers<[1], [0], [0], [1], [0, 0, 1, 1], [], []>} : vector<16x64xf32>, vector<64x64xf32>, vector<16x64xf32> -> vector<16x64xf32>
    %c0_4 = arith.constant 0 : index
    %c0_5 = arith.constant 0 : index
    %4 = vector.load %arg3[%c0_4, %c0_5] : memref<1x64xf32, #tpu.memory_space<vmem>>, vector<1x64xf32>
    %5 = vector.broadcast %4 : vector<1x64xf32> to vector<16x64xf32>
    %6 = arith.addf %3, %5 : vector<16x64xf32>
    %cst_6 = arith.constant 0.000000e+00 : f32
    %7 = vector.broadcast %cst_6 : f32 to vector<16x64xf32>
    %8 = arith.maximumf %6, %7 : vector<16x64xf32>
    %cst_7 = arith.constant 0.000000e+00 : f32
    %9 = vector.broadcast %cst_7 : f32 to vector<16x896xf32>
    %c0_8 = arith.constant 0 : index
    %c0_9 = arith.constant 0 : index
    %10 = vector.load %arg9[%c0_8, %c0_9] : memref<16x896xf32, #tpu.memory_space<vmem>>, vector<16x896xf32>
    tpu.vector_store %arg9[%c0_8, %c0_9], %9 {strides = array<i32>} : memref<16x896xf32, #tpu.memory_space<vmem>>, vector<16x896xf32>,
    %11 = vector.extract_strided_slice %8 {offsets = [0, 0], sizes = [13, 64], strides = [1, 1]} : vector<16x64xf32> to vector<13x64xf32>
    %c3 = arith.constant 3 : index
    %c0_10 = arith.constant 0 : index
    %12 = vector.load %arg9[%c3, %c0_10] : memref<16x896xf32, #tpu.memory_space<vmem>>, vector<13x64xf32>
    tpu.vector_store %arg9[%c3, %c0_10], %11 {strides = array<i32>} : memref<16x896xf32, #tpu.memory_space<vmem>>, vector<13x64xf32>,
    %13 = vector.extract_strided_slice %8 {offsets = [0, 0], sizes = [14, 64], strides = [1, 1]} : vector<16x64xf32> to vector<14x64xf32>
    %c2 = arith.constant 2 : index
    %c128 = arith.constant 128 : index
    %14 = vector.load %arg9[%c2, %c128] : memref<16x896xf32, #tpu.memory_space<vmem>>, vector<14x64xf32>
    tpu.vector_store %arg9[%c2, %c128], %13 {strides = array<i32>} : memref<16x896xf32, #tpu.memory_space<vmem>>, vector<14x64xf32>,
    %15 = vector.extract_strided_slice %8 {offsets = [0, 0], sizes = [15, 64], strides = [1, 1]} : vector<16x64xf32> to vector<15x64xf32>
    %c1 = arith.constant 1 : index
    %c256 = arith.constant 256 : index
    %16 = vector.load %arg9[%c1, %c256] : memref<16x896xf32, #tpu.memory_space<vmem>>, vector<15x64xf32>
    tpu.vector_store %arg9[%c1, %c256], %15 {strides = array<i32>} : memref<16x896xf32, #tpu.memory_space<vmem>>, vector<15x64xf32>,
    %c0_11 = arith.constant 0 : index
    %c384 = arith.constant 384 : index
    %17 = vector.load %arg9[%c0_11, %c384] : memref<16x896xf32, #tpu.memory_space<vmem>>, vector<16x64xf32>
    tpu.vector_store %arg9[%c0_11, %c384], %8 {strides = array<i32>} : memref<16x896xf32, #tpu.memory_space<vmem>>, vector<16x64xf32>,
    %18 = vector.extract_strided_slice %8 {offsets = [1, 0], sizes = [15, 64], strides = [1, 1]} : vector<16x64xf32> to vector<15x64xf32>
    %c0_12 = arith.constant 0 : index
    %c512 = arith.constant 512 : index
    %19 = vector.load %arg9[%c0_12, %c512] : memref<16x896xf32, #tpu.memory_space<vmem>>, vector<15x64xf32>
    tpu.vector_store %arg9[%c0_12, %c512], %18 {strides = array<i32>} : memref<16x896xf32, #tpu.memory_space<vmem>>, vector<15x64xf32>,
    %20 = vector.extract_strided_slice %8 {offsets = [2, 0], sizes = [14, 64], strides = [1, 1]} : vector<16x64xf32> to vector<14x64xf32>
    %c0_13 = arith.constant 0 : index
    %c640 = arith.constant 640 : index
    %21 = vector.load %arg9[%c0_13, %c640] : memref<16x896xf32, #tpu.memory_space<vmem>>, vector<14x64xf32>
    tpu.vector_store %arg9[%c0_13, %c640], %20 {strides = array<i32>} : memref<16x896xf32, #tpu.memory_space<vmem>>, vector<14x64xf32>,
    %22 = vector.extract_strided_slice %8 {offsets = [3, 0], sizes = [13, 64], strides = [1, 1]} : vector<16x64xf32> to vector<13x64xf32>
    %c0_14 = arith.constant 0 : index
    %c768 = arith.constant 768 : index
    %23 = vector.load %arg9[%c0_14, %c768] : memref<16x896xf32, #tpu.memory_space<vmem>>, vector<13x64xf32>
    tpu.vector_store %arg9[%c0_14, %c768], %22 {strides = array<i32>} : memref<16x896xf32, #tpu.memory_space<vmem>>, vector<13x64xf32>,
    %c0_15 = arith.constant 0 : index
    %c0_16 = arith.constant 0 : index
    %24 = vector.load %arg9[%c0_15, %c0_16] : memref<16x896xf32, #tpu.memory_space<vmem>>, vector<16x896xf32>
    %c0_17 = arith.constant 0 : index
    %c0_18 = arith.constant 0 : index
    %25 = vector.load %arg4[%c0_17, %c0_18] : memref<896x120xf32, #tpu.memory_space<vmem>>, vector<896x120xf32>
    %cst_19 = arith.constant dense<0.000000e+00> : vector<16x120xf32>
    %26 = tpu.matmul %24, %25, %cst_19 {dimension_numbers = #tpu.dot_dimension_numbers<[1], [0], [0], [1], [0, 0, 1, 1], [], []>} : vector<16x896xf32>, vector<896x120xf32>, vector<16x120xf32> -> vector<16x120xf32>
    %c0_20 = arith.constant 0 : index
    %c0_21 = arith.constant 0 : index
    %27 = vector.load %arg5[%c0_20, %c0_21] : memref<1x120xf32, #tpu.memory_space<vmem>>, vector<1x120xf32>
    %28 = vector.broadcast %27 : vector<1x120xf32> to vector<16x120xf32>
    %29 = arith.addf %26, %28 : vector<16x120xf32>
    %cst_22 = arith.constant 0.000000e+00 : f32
    %30 = vector.broadcast %cst_22 : f32 to vector<16x120xf32>
    %31 = arith.maximumf %29, %30 : vector<16x120xf32>
    %cst_23 = arith.constant 0.000000e+00 : f32
    %32 = vector.broadcast %cst_23 : f32 to vector<16x188xf32>
    %c0_24 = arith.constant 0 : index
    %c0_25 = arith.constant 0 : index
    %33 = vector.load %arg10[%c0_24, %c0_25] : memref<16x188xf32, #tpu.memory_space<vmem>>, vector<16x188xf32>
    tpu.vector_store %arg10[%c0_24, %c0_25], %32 {strides = array<i32>} : memref<16x188xf32, #tpu.memory_space<vmem>>, vector<16x188xf32>,
    %c0_26 = arith.constant 0 : index
    %c0_27 = arith.constant 0 : index
    %34 = vector.load %arg10[%c0_26, %c0_27] : memref<16x188xf32, #tpu.memory_space<vmem>>, vector<16x120xf32>
    tpu.vector_store %arg10[%c0_26, %c0_27], %31 {strides = array<i32>} : memref<16x188xf32, #tpu.memory_space<vmem>>, vector<16x120xf32>,
    %35 = vector.extract_strided_slice %1 {offsets = [0, 0], sizes = [16, 60], strides = [1, 1]} : vector<16x64xf32> to vector<16x60xf32>
    %c0_28 = arith.constant 0 : index
    %c128_29 = arith.constant 128 : index
    %36 = vector.load %arg10[%c0_28, %c128_29] : memref<16x188xf32, #tpu.memory_space<vmem>>, vector<16x60xf32>
    tpu.vector_store %arg10[%c0_28, %c128_29], %35 {strides = array<i32>} : memref<16x188xf32, #tpu.memory_space<vmem>>, vector<16x60xf32>,
    %c0_30 = arith.constant 0 : index
    %c0_31 = arith.constant 0 : index
    %37 = vector.load %arg10[%c0_30, %c0_31] : memref<16x188xf32, #tpu.memory_space<vmem>>, vector<16x188xf32>
    %c0_32 = arith.constant 0 : index
    %c0_33 = arith.constant 0 : index
    %38 = vector.load %arg6[%c0_32, %c0_33] : memref<188x240xf32, #tpu.memory_space<vmem>>, vector<188x240xf32>
    %cst_34 = arith.constant dense<0.000000e+00> : vector<16x240xf32>
    %39 = tpu.matmul %37, %38, %cst_34 {dimension_numbers = #tpu.dot_dimension_numbers<[1], [0], [0], [1], [0, 0, 1, 1], [], []>} : vector<16x188xf32>, vector<188x240xf32>, vector<16x240xf32> -> vector<16x240xf32>
    %c0_35 = arith.constant 0 : index
    %c0_36 = arith.constant 0 : index
    %40 = vector.load %arg7[%c0_35, %c0_36] : memref<1x240xf32, #tpu.memory_space<vmem>>, vector<1x240xf32>
    %41 = vector.broadcast %40 : vector<1x240xf32> to vector<16x240xf32>
    %42 = arith.addf %39, %41 : vector<16x240xf32>
    %cst_37 = arith.constant 0.000000e+00 : f32
    %43 = vector.broadcast %cst_37 : f32 to vector<16x240xf32>
    %44 = arith.maximumf %42, %43 : vector<16x240xf32>
    %c0_38 = arith.constant 0 : index
    %c0_39 = arith.constant 0 : index
    %c0_40 = arith.constant 0 : index
    %45 = vector.load %arg8[%c0_38, %c0_39, %c0_40] : memref<1x16x240xf32, #tpu.memory_space<vmem>>, vector<1x16x240xf32>
    %46 = vector.shape_cast %45 : vector<1x16x240xf32> to vector<16x240xf32>
    %47 = vector.shape_cast %44 : vector<16x240xf32> to vector<1x16x240xf32>
    tpu.vector_store %arg8[%c0_38, %c0_39, %c0_40], %47 {strides = array<i32>} : memref<1x16x240xf32, #tpu.memory_space<vmem>>, vector<1x16x240xf32>,
    return
  }
  func.func @transform_0(%arg0: i32) -> (i32, i32, i32) {
    %c0_i32 = arith.constant 0 : i32
    %c0_i32_0 = arith.constant 0 : i32
    %c0_i32_1 = arith.constant 0 : i32
    return %arg0, %c0_i32, %c0_i32_0 : i32, i32, i32
  }
  func.func @transform_1(%arg0: i32) -> (i32, i32) {
    %c0_i32 = arith.constant 0 : i32
    %c0_i32_0 = arith.constant 0 : i32
    %c0_i32_1 = arith.constant 0 : i32
    return %c0_i32, %c0_i32_0 : i32, i32
  }
  func.func @transform_2(%arg0: i32) -> (i32, i32) {
    %c0_i32 = arith.constant 0 : i32
    %c0_i32_0 = arith.constant 0 : i32
    %c0_i32_1 = arith.constant 0 : i32
    return %c0_i32, %c0_i32_0 : i32, i32
  }
  func.func @transform_3(%arg0: i32) -> (i32, i32) {
    %c0_i32 = arith.constant 0 : i32
    %c0_i32_0 = arith.constant 0 : i32
    %c0_i32_1 = arith.constant 0 : i32
    return %c0_i32, %c0_i32_0 : i32, i32
  }
  func.func @transform_4(%arg0: i32) -> (i32, i32) {
    %c0_i32 = arith.constant 0 : i32
    %c0_i32_0 = arith.constant 0 : i32
    %c0_i32_1 = arith.constant 0 : i32
    return %c0_i32, %c0_i32_0 : i32, i32
  }
  func.func @transform_5(%arg0: i32) -> (i32, i32) {
    %c0_i32 = arith.constant 0 : i32
    %c0_i32_0 = arith.constant 0 : i32
    %c0_i32_1 = arith.constant 0 : i32
    return %c0_i32, %c0_i32_0 : i32, i32
  }
  func.func @transform_6(%arg0: i32) -> (i32, i32) {
    %c0_i32 = arith.constant 0 : i32
    %c0_i32_0 = arith.constant 0 : i32
    %c0_i32_1 = arith.constant 0 : i32
    return %c0_i32, %c0_i32_0 : i32, i32
  }
  func.func @transform_7(%arg0: i32) -> (i32, i32, i32) {
    %c0_i32 = arith.constant 0 : i32
    %c0_i32_0 = arith.constant 0 : i32
    %c0_i32_1 = arith.constant 0 : i32
    return %arg0, %c0_i32, %c0_i32_0 : i32, i32, i32
  }
}

</mosaic_0001>

<bundles_post_ra>
// kernel: tpu_custom_call.1
= control target key start
LH: loop header
LB: loop body
LE: loop exit
PB: predicated region body
PF: predicated region fallthrough
CT: control target
= control target key end

     0   :  { %12 = vsyncpa [#allocation5], 0  ;;  %s2147_s0 = inlined_call_operand.vmem [shape: f32[2,16,64], index: 0, kind: input, shape index: {}]   ;;  %s2148_s1 = inlined_call_operand.vmem [shape: f32[64,64], index: 1, kind: input, shape index: {}]   ;;  %s2149_s2 = inlined_call_operand.vmem [shape: f32[1,64], index: 2, kind: input, shape index: {}]   ;;  %s2150_s3 = inlined_call_operand.vmem [shape: f32[896,120], index: 3, kind: input, shape index: {}]   ;;  %s2151_s4 = inlined_call_operand.vmem [shape: f32[1,120], index: 4, kind: input, shape index: {}]   ;;  %s2152_s5 = inlined_call_operand.vmem [shape: f32[188,240], index: 5, kind: input, shape index: {}]   ;;  %s2153_s6 = inlined_call_operand.vmem [shape: f32[1,240], index: 6, kind: input, shape index: {}]   ;;  %s2154_s7 = inlined_call_operand.hbm [shape: f32[2,16,240], index: 7, kind: output, shape index: {}]  }
   0x1   :  { %14 = vsyncpa [#allocation5 + $0x1], 0  ;;  %s1500_s24 = smov 0   ;;  %s1502_s25 = smov 0  }
   0x2   :  { %s1504_s26 = smov 0   ;;  %s1506_s27 = smov 0  }
   0x3 LB: > { %s1521_s28 = sadd.s32 4294967295, %s1454_s27   ;;  %s1134_s29 = sadd.s32 4294967294, %s1454_s27   ;;  %s1454_s27 = sphi %s1506_s27, %s2160_s27   ;;  %s1450_s26 = sphi %s1504_s26, %s2159_s26   ;;  %s1446_s25 = sphi %s1502_s25, %s2158_s25   ;;  %s1442_s24 = sphi %s1500_s24, %s2157_s24  }
   0x4   : > { %s1525_s30 = sadd.s32 1, %s1454_s27   ;;  %s179_s8 = sadd.s32 1, %s1450_s26 }
   0x5   : > { %s176_s9 = ssub.s32 %s1454_s27, %s1525_s30  ;;  %p189_p0 = scmp.ne.s32.totalorder %s1450_s26, %s1446_s25 }
   0x6   : > { %p177_p1 = scmp.eq.s32.totalorder %s176_s9, 0  ;;  %p190_p2 = scmp.eq.s32.totalorder %s1521_s28, 1 }
   0x7   : > { %p195_p3 = scmp.ne.s32.totalorder %s1446_s25, %s1442_s24  ;;  %p196_p4 = scmp.eq.s32.totalorder %s1134_s29, 1 }
   0x8   : > { %s1536_s10 = scalar_select %p177_p1, %s1450_s26, %s179_s8  }
   0x9   : > { %p1538_p5 = por %p190_p2, %p189_p0  ;;  %p1542_p6 = por %p196_p4, %p195_p3 }
   0xa   : > { %p1137_p7 = scmp.ge.s32.totalorder %s1454_s27, 1  ;;  %p240_p8 = scmp.lt.s32.totalorder %s1454_s27, 3 }
   0xc   : > { %p241_p9 = pnand %p1137_p7, %p240_p8 }
   0xd   : > { %p272_p10 = scmp.lt.s32.totalorder (!%p241_p9), %s1521_s28, 1  ;;  %s1457_s20 = smov (!%p241_p9), [#allocation4]  }
   0xe   : > { %244 = sbr.rel (%p241_p9) target bundleno = 738 (0x2e2), region = 48  ;;  %s1398_s21 = sshll.u32 (!%p241_p9), %s1457_s20, 4  ;;  %s1399_s21 = int_to_ptr.vmem [resolvable:$false] %s1398_s21 }
  0x13   : > { %v286_v0 = vld [vmem:[%s2148_s1 + $0x38] sm:$0xff]  ;;  %v285_v1 = vld [vmem:[%s2148_s1 + $0x30] sm:$0xff]  ;;  %vm886_vm0 = vcmask 490496   ;;  %v1456_v2 = vmov 0.0   ;;  %v284_v3 = vld [vmem:[%s2148_s1 + $0x28] sm:$0xff]  ;;  %s273_s19 = scalar_select %p272_p10, %s1521_s28, 1 }
  0x14   : > { %1298 = vmatprep.subr.mxu1 %v286_v0  ;;  %378 = vst [vmem:[#allocation2] sm:$0xff] %v1456_v2  ;;  %379 = vst [vmem:[#allocation2 + $0x8] sm:$0xff] %v1456_v2  ;;  %v495_v4 = vld [vmem:[%s2150_s3 + $0xf8] sm:$0xff]  ;;  %v494_v6 = vld [vmem:[%s2150_s3 + $0xf0] sm:$0xff]  ;;  %vm294_vm1 = vcmask 523264   ;;  %vm430_vm2 = vcmask 522240  }
  0x15   : > { %380 = vst [vmem:[#allocation2 + $0x10] sm:$0xff] %v1456_v2  ;;  %381 = vst [vmem:[#allocation2 + $0x18] sm:$0xff] %v1456_v2  ;;  %1299 = vmatpush3.msra.mxu1 %v286_v0  ;;  %1166 = vmatprep.subr.mxu0 %v495_v4  ;;  %v479_v5 = vld [vmem:[%s2150_s3 + $0x78] sm:$0xff]  ;;  %v283_v7 = vld [vmem:[%s2148_s1 + $0x20] sm:$0xff]  ;;  %s1154_s14 = sshll.u32 %s273_s19, 4  ;;  %vm439_vm3 = vcmask 521216  }
  0x16   : > { %382 = vst [vmem:[#allocation2 + $0x20] sm:$0xff] %v1456_v2  ;;  %383 = vst [vmem:[#allocation2 + $0x28] sm:$0xff] %v1456_v2  ;;  %1300 = vmatprep.subr.mxu1 %v285_v1  ;;  %1167 = vmatpush3.msra.mxu0 %v479_v5  ;;  %v478_v8 = vld [vmem:[%s2150_s3 + $0x70] sm:$0xff]  ;;  %v282_v9 = vld [vmem:[%s2148_s1 + $0x18] sm:$0xff]  ;;  %s276_s22 = scalar_lea.vmem %s2147_s0, %s1154_s14  ;;  %vm448_vm4 = vcmask 520192   ;;  %vm394_vm5 = vcmask 1042432  }
  0x17   : > { %384 = vst [vmem:[#allocation2 + $0x30] sm:$0xff] %v1456_v2  ;;  %385 = vst [vmem:[#allocation2 + $0x38] sm:$0xff] %v1456_v2  ;;  %1301 = vmatpush3.msra.mxu1 %v285_v1  ;;  %1168 = vmatprep.subr.mxu0 %v494_v6  ;;  %v493_v10 = vld [vmem:[%s2150_s3 + $0xe8] sm:$0xff]  ;;  %v277_v11 = vld [vmem:[%s276_s22] sm:$0xff]  ;;  %vm400_vm6 = vcmask 523267   ;;  %vm403_vm7 = vcmask 1041408  }
  0x18   : > { %386 = vst [vmem:[#allocation2 + $0x40] sm:$0xff] %v1456_v2  ;;  %387 = vst [vmem:[#allocation2 + $0x48] sm:$0xff] %v1456_v2  ;;  %1302 = vmatprep.subr.mxu1 %v284_v3  ;;  %v278_v12 = vld [vmem:[%s276_s22 + $0x8] sm:$0xff]  ;;  %1169 = vmatpush3.msra.mxu0 %v478_v8  ;;  %v492_v14 = vld [vmem:[%s2150_s3 + $0xe0] sm:$0xff]  ;;  %vm409_vm8 = vcmask 523266   ;;  %vm412_vm9 = vcmask 1040384  }
  0x19   : > { %388 = vst [vmem:[#allocation2 + $0x50] sm:$0xff] %v1456_v2  ;;  %389 = vst [vmem:[#allocation2 + $0x58] sm:$0xff] %v1456_v2  ;;  %1303 = vmatpush3.msra.mxu1 %v284_v3  ;;  %v477_v13 = vld [vmem:[%s2150_s3 + $0x68] sm:$0xff]  ;;  %1314 = vmatprep.mubr.msk.f32.mxu1 %vm294_vm1, %v277_v11  ;;  %v281_v15 = vld [vmem:[%s2148_s1 + $0x10] sm:$0xff]  ;;  %vm418_vm10 = vcmask 523265   ;;  %vm423_vm11 = vcmask 1046528  }
  0x1a   : > { %390 = vst [vmem:[#allocation2 + $0x60] sm:$0xff] %v1456_v2  ;;  %391 = vst [vmem:[#allocation2 + $0x68] sm:$0xff] %v1456_v2  ;;  %1304 = vmatprep.subr.mxu1 %v283_v7  ;;  %1170 = vmatprep.subr.mxu0 %v493_v10  ;;  %v476_v16 = vld [vmem:[%s2150_s3 + $0x60] sm:$0xff]  ;;  %v491_v17 = vld [vmem:[%s2150_s3 + $0xd8] sm:$0xff]  ;;  %vm432_vm12 = vcmask 1045504   ;;  %vm441_vm13 = vcmask 1044480  }
  0x1b   : > { %885 = vst [vmem:[#allocation3] sm:$0xff] %v1456_v2  ;;  %888 = vst [vmem:[#allocation3 + $0x10] sm:$0xff] %v1456_v2  ;;  %1305 = vmatpush3.msra.mxu1 %v283_v7  ;;  %1171 = vmatpush3.msra.mxu0 %v477_v13  ;;  %v280_v18 = vld [vmem:[%s2148_s1 + $0x8] sm:$0xff]  ;;  %v475_v19 = vld [vmem:[%s2150_s3 + $0x58] sm:$0xff]  ;;  %vm965_vm14 = vcmask 1043456   ;;  %vm890_vm15 = vcmask 982016  }
  0x1c   : > { %887 = vst.msk [vmem:[#allocation3 + $0x8] sm:$0xff] %vm886_vm0, %v1456_v2  ;;  %889 = vst.msk [vmem:[#allocation3 + $0x18] sm:$0xff] %vm886_vm0, %v1456_v2  ;;  %1306 = vmatprep.subr.mxu1 %v282_v9  ;;  %1172 = vmatprep.subr.mxu0 %v492_v14  ;;  %v490_v20 = vld [vmem:[%s2150_s3 + $0xd0] sm:$0xff]  ;;  %v279_v21 = vld [vmem:[%s2148_s1] sm:$0xff]  ;;  %s269_s19 = sand.u32 1, %s1446_s25   ;;  %s1155_s14 = sshll.u32 %s1521_s28, 9 }
  0x1d   : > { %893 = vst.msk [vmem:[#allocation3 + $0x8] sm:$0xff] %vm886_vm0, %v277_v11  ;;  %894 = vst.msk [vmem:[#allocation3 + $0x18] sm:$0xff] %vm886_vm0, %v278_v12  ;;  %1307 = vmatpush3.msra.mxu1 %v282_v9  ;;  %1173 = vmatpush3.msra.mxu0 %v476_v16  ;;  %v474_v22 = vld [vmem:[%s2150_s3 + $0x50] sm:$0xff]  ;;  %v489_v23 = vld [vmem:[%s2150_s3 + $0xc8] sm:$0xff]  ;;  %s1138_s8 = sshll.u32 %s269_s19, 5  ;;  %s2104_s17 = scalar_lea.hbm %s2154_s7, %s1155_s14 }
  0x1e   : > { %1308 = vmatprep.subr.mxu1 %v281_v15  ;;  %1174 = vmatprep.subr.mxu0 %v491_v17  ;;  %v559_v24 = vld [vmem:[%s2150_s3 + $0x2f8] sm:$0xff]  ;;  %v473_v26 = vld [vmem:[%s2150_s3 + $0x48] sm:$0xff]  ;;  %v558_v27 = vld [vmem:[%s2150_s3 + $0x2f0] sm:$0xff]  ;;  %s271_s9 = scalar_lea.vmem [#allocation4], %s1138_s8  ;;  %s2107_s28 = scalar_lea.sflag [#allocation5], %s269_s19 }
  0x1f   : > { %1309 = vmatpush3.msra.mxu1 %v281_v15  ;;  %1175 = vmatpush3.msra.mxu0 %v475_v19  ;;  %v543_v25 = vld [vmem:[%s2150_s3 + $0x278] sm:$0xff]  ;;  %v488_v28 = vld [vmem:[%s2150_s3 + $0xc0] sm:$0xff]  ;;  %v542_v29 = vld [vmem:[%s2150_s3 + $0x270] sm:$0xff]  ;;  %s1072_s13 = sshll.u32 %s271_s9, 4  ;;  %s1400_s22 = scalar_lea.vmem %s1399_s21, 1024  ;;  %s2099_s13 = int_to_ptr.vmem [resolvable:$true] %s1072_s13 }
  0x20   : > { %1310 = vmatprep.subr.mxu1 %v280_v18  ;;  %1176 = vmatprep.subr.mxu0 %v490_v20  ;;  %v557_v30 = vld [vmem:[%s2150_s3 + $0x2e8] sm:$0xff]  ;;  %v556_v32 = vld [vmem:[%s2150_s3 + $0x2e0] sm:$0xff]  ;;  %v555_v34 = vld [vmem:[%s2150_s3 + $0x2d8] sm:$0xff]  ;;  %s1394_s18 = scalar_lea.vmem %s2099_s13, 512  ;;  %p1401_p0 = scmp.lt.s32.totalorder %s2099_s13, %s1399_s21 }
  0x21   : > { %1311 = vmatpush3.msra.mxu1 %v280_v18  ;;  %1177 = vmatpush3.msra.mxu0 %v474_v22  ;;  %v541_v31 = vld [vmem:[%s2150_s3 + $0x268] sm:$0xff]  ;;  %v540_v33 = vld [vmem:[%s2150_s3 + $0x260] sm:$0xff]  ;;  %v539_v35 = vld [vmem:[%s2150_s3 + $0x258] sm:$0xff]  ;;  %p1395_p11 = scmp.ne.s32.totalorder %s2099_s13, %s1394_s18  ;;  %p1402_p1 = scmp.lt.s32.totalorder %s1400_s22, %s1394_s18 }
  0x22   : > { %1312 = vmatprep.subr.mxu1 %v279_v21  ;;  %1178 = vmatprep.subr.mxu0 %v489_v23  ;;  %v554_v36 = vld [vmem:[%s2150_s3 + $0x2d0] sm:$0xff]  ;;  %v553_v38 = vld [vmem:[%s2150_s3 + $0x2c8] sm:$0xff]  ;;  %v472_v39 = vld [vmem:[%s2150_s3 + $0x40] sm:$0xff] }
  0x23   : > { %1313 = vmatpush3.msra.mxu1 %v279_v21  ;;  %1179 = vmatpush3.msra.mxu0 %v473_v26  ;;  %v538_v37 = vld [vmem:[%s2150_s3 + $0x250] sm:$0xff]  ;;  %v537_v40 = vld [vmem:[%s2150_s3 + $0x248] sm:$0xff]  ;;  %v487_v41 = vld [vmem:[%s2150_s3 + $0xb8] sm:$0xff]  ;;  %p1396_p12 = pnand %p1395_p11, %p1538_p5  ;;  %p1403_p2 = por %p1402_p1, %p1401_p0 }
  0x24   : > { %1315 = vmatmul.mubr.msk.f32.vlgmr.msra.gmra.mxu1 %vm294_vm1, %v278_v12  ;;  %1242 = vmatprep.subr.mxu1 %v559_v24  ;;  %v552_v42 = vld [vmem:[%s2150_s3 + $0x2c0] sm:$0xff]  ;;  %v471_v43 = vld [vmem:[%s2150_s3 + $0x38] sm:$0xff]  ;;  %v486_v45 = vld [vmem:[%s2150_s3 + $0xb0] sm:$0xff] }
  0x25   : > { %1243 = vmatpush3.msra.mxu1 %v543_v25  ;;  %1180 = vmatprep.subr.mxu0 %v488_v28  ;;  %v536_v44 = vld [vmem:[%s2150_s3 + $0x240] sm:$0xff]  ;;  %v551_v46 = vld [vmem:[%s2150_s3 + $0x2b8] sm:$0xff]  ;;  %v470_v47 = vld [vmem:[%s2150_s3 + $0x30] sm:$0xff]  ;;  %p1397_p13 = pneg %p1396_p12 }
  0x26   : > { %1244 = vmatprep.subr.mxu1 %v558_v27  ;;  %1181 = vmatpush3.msra.mxu0 %v472_v39  ;;  %v535_v48 = vld [vmem:[%s2150_s3 + $0x238] sm:$0xff]  ;;  %v485_v49 = vld [vmem:[%s2150_s3 + $0xa8] sm:$0xff]  ;;  %v550_v50 = vld [vmem:[%s2150_s3 + $0x2b0] sm:$0xff] }
  0x27   : > { %1245 = vmatpush3.msra.mxu1 %v542_v29  ;;  %1182 = vmatprep.subr.mxu0 %v487_v41  ;;  %v469_v51 = vld [vmem:[%s2150_s3 + $0x28] sm:$0xff]  ;;  %v534_v52 = vld [vmem:[%s2150_s3 + $0x230] sm:$0xff]  ;;  %v484_v53 = vld [vmem:[%s2150_s3 + $0xa0] sm:$0xff]  ;;  %p1404_p3 = pnand %p1403_p2, %p1397_p13 }
  0x28   : > { %1246 = vmatprep.subr.mxu1 %v557_v30  ;;  %1183 = vmatpush3.msra.mxu0 %v471_v43  ;;  %v549_v54 = vld [vmem:[%s2150_s3 + $0x2a8] sm:$0xff]  ;;  %v468_v55 = vld [vmem:[%s2150_s3 + $0x20] sm:$0xff]  ;;  %v483_v57 = vld [vmem:[%s2150_s3 + $0x98] sm:$0xff] }
  0x29   : > { %1247 = vmatpush3.msra.mxu1 %v541_v31  ;;  %1184 = vmatprep.subr.mxu0 %v486_v45  ;;  %v533_v56 = vld [vmem:[%s2150_s3 + $0x228] sm:$0xff]  ;;  %v548_v58 = vld [vmem:[%s2150_s3 + $0x2a0] sm:$0xff]  ;;  %v467_v59 = vld [vmem:[%s2150_s3 + $0x18] sm:$0xff] }
  0x2a   : > { %1248 = vmatprep.subr.mxu1 %v556_v32  ;;  %1185 = vmatpush3.msra.mxu0 %v470_v47  ;;  %v532_v60 = vld [vmem:[%s2150_s3 + $0x220] sm:$0xff]  ;;  %v482_v61 = vld [vmem:[%s2150_s3 + $0x90] sm:$0xff]  ;;  %v547_v62 = vld [vmem:[%s2150_s3 + $0x298] sm:$0xff] }
  0x2b   : > { %1249 = vmatpush3.msra.mxu1 %v540_v33  ;;  %1186 = vmatprep.subr.mxu0 %v485_v49  ;;  %v466_v63 = vld [vmem:[%s2150_s3 + $0x10] sm:$0xff]  ;;  %v531_v0 = vld [vmem:[%s2150_s3 + $0x218] sm:$0xff]  ;;  %v481_v1 = vld [vmem:[%s2150_s3 + $0x88] sm:$0xff] }
  0x2c   : > { %1250 = vmatprep.subr.mxu1 %v555_v34  ;;  %1187 = vmatpush3.msra.mxu0 %v469_v51  ;;  %v546_v2 = vld [vmem:[%s2150_s3 + $0x290] sm:$0xff]  ;;  %v465_v3 = vld [vmem:[%s2150_s3 + $0x8] sm:$0xff]  ;;  %v480_v5 = vld [vmem:[%s2150_s3 + $0x80] sm:$0xff] }
  0x2d   : > { %1251 = vmatpush3.msra.mxu1 %v539_v35  ;;  %1188 = vmatprep.subr.mxu0 %v484_v53  ;;  %v530_v4 = vld [vmem:[%s2150_s3 + $0x210] sm:$0xff]  ;;  %v545_v6 = vld [vmem:[%s2150_s3 + $0x288] sm:$0xff]  ;;  %v464_v7 = vld [vmem:[%s2150_s3] sm:$0xff] }
  0x2e   : > { %1252 = vmatprep.subr.mxu1 %v554_v36  ;;  %1189 = vmatpush3.msra.mxu0 %v468_v55  ;;  %v529_v8 = vld [vmem:[%s2150_s3 + $0x208] sm:$0xff]  ;;  %v527_v9 = vld [vmem:[%s2150_s3 + $0x1f8] sm:$0xff]  ;;  %v544_v10 = vld [vmem:[%s2150_s3 + $0x280] sm:$0xff] }
  0x2f   : > { %1253 = vmatpush3.msra.mxu1 %v538_v37  ;;  %1190 = vmatprep.subr.mxu0 %v483_v57  ;;  %v528_v11 = vld [vmem:[%s2150_s3 + $0x200] sm:$0xff]  ;;  %v511_v39 = vld [vmem:[%s2150_s3 + $0x178] sm:$0xff]  ;;  %v526_v41 = vld [vmem:[%s2150_s3 + $0x1f0] sm:$0xff] }
  0x30   : > { %1254 = vmatprep.subr.mxu1 %v553_v38  ;;  %1191 = vmatpush3.msra.mxu0 %v467_v59  ;;  %v1141_v12 = vld [vmem:[%s2149_s2] ss:$0 sm:$0xff]  ;;  %v525_v45 = vld [vmem:[%s2150_s3 + $0x1e8] sm:$0xff]  ;;  %v523_v53 = vld [vmem:[%s2150_s3 + $0x1d8] sm:$0xff] }
  0x31   : > { %1255 = vmatpush3.msra.mxu1 %v537_v40  ;;  %1192 = vmatprep.subr.mxu0 %v482_v61  ;;  %v509_v47 = vld [vmem:[%s2150_s3 + $0x168] sm:$0xff]  ;;  %v524_v49 = vld [vmem:[%s2150_s3 + $0x1e0] sm:$0xff]  ;;  %v522_v55 = vld [vmem:[%s2150_s3 + $0x1d0] sm:$0xff] }
  0x32   : > { %1256 = vmatprep.subr.mxu1 %v552_v42  ;;  %1193 = vmatpush3.msra.mxu0 %v466_v63  ;;  %v508_v51 = vld [vmem:[%s2150_s3 + $0x160] sm:$0xff]  ;;  %v521_v57 = vld [vmem:[%s2150_s3 + $0x1c8] sm:$0xff]  ;;  %v519_v61 = vld [vmem:[%s2150_s3 + $0x1b8] sm:$0xff] }
  0x33   : > { %1257 = vmatpush3.msra.mxu1 %v536_v44  ;;  %1194 = vmatprep.subr.mxu0 %v481_v1  ;;  %v510_v44 = vld [vmem:[%s2150_s3 + $0x170] sm:$0xff]  ;;  %v520_v59 = vld [vmem:[%s2150_s3 + $0x1c0] sm:$0xff]  ;;  %v517_v1 = vld [vmem:[%s2150_s3 + $0x1a8] sm:$0xff] }
  0x34   : > { %1258 = vmatprep.subr.mxu1 %v551_v46  ;;  %1195 = vmatpush3.msra.mxu0 %v465_v3  ;;  %v518_v63 = vld [vmem:[%s2150_s3 + $0x1b0] sm:$0xff]  ;;  %v516_v3 = vld [vmem:[%s2150_s3 + $0x1a0] sm:$0xff] }
  0x35   : > { %1259 = vmatpush3.msra.mxu1 %v535_v48  ;;  %1196 = vmatprep.subr.mxu0 %v480_v5  ;;  %v515_v5 = vld [vmem:[%s2150_s3 + $0x198] sm:$0xff] }
  0x36   : > { %1260 = vmatprep.subr.mxu1 %v550_v50  ;;  %1197 = vmatpush3.msra.mxu0 %v464_v7  ;;  %v514_v7 = vld [vmem:[%s2150_s3 + $0x190] sm:$0xff] }
  0x37   : > { %1261 = vmatpush3.msra.mxu1 %v534_v52  ;;  %1204 = vmatprep.subr.mxu0 %v527_v9  ;;  %v513_v9 = vld [vmem:[%s2150_s3 + $0x188] sm:$0xff] }
  0x38   : > { %1262 = vmatprep.subr.mxu1 %v549_v54  ;;  %v507_v54 = vld [vmem:[%s2150_s3 + $0x158] sm:$0xff] }
  0x39   : > { %1263 = vmatpush3.msra.mxu1 %v533_v56  ;;  %v506_v56 = vld [vmem:[%s2150_s3 + $0x150] sm:$0xff] }
  0x3a   : > { %1264 = vmatprep.subr.mxu1 %v548_v58  ;;  %v505_v58 = vld [vmem:[%s2150_s3 + $0x148] sm:$0xff] }
  0x3b   : > { %1265 = vmatpush3.msra.mxu1 %v532_v60  ;;  %v504_v60 = vld [vmem:[%s2150_s3 + $0x140] sm:$0xff] }
  0x3c   : > { %1266 = vmatprep.subr.mxu1 %v547_v62  ;;  %v503_v62 = vld [vmem:[%s2150_s3 + $0x138] sm:$0xff] }
  0x3d   : > { %1267 = vmatpush3.msra.mxu1 %v531_v0  ;;  %v502_v0 = vld [vmem:[%s2150_s3 + $0x130] sm:$0xff] }
  0x3e   : > { %1268 = vmatprep.subr.mxu1 %v546_v2  ;;  %v501_v2 = vld [vmem:[%s2150_s3 + $0x128] sm:$0xff] }
  0x3f   : > { %1269 = vmatpush3.msra.mxu1 %v530_v4  ;;  %v500_v4 = vld [vmem:[%s2150_s3 + $0x120] sm:$0xff] }
  0x40   : > { %1270 = vmatprep.subr.mxu1 %v545_v6  ;;  %v499_v6 = vld [vmem:[%s2150_s3 + $0x118] sm:$0xff] }
  0x41   : > { %1271 = vmatpush3.msra.mxu1 %v529_v8  ;;  %v498_v8 = vld [vmem:[%s2150_s3 + $0x110] sm:$0xff] }
  0x42   : > { %1272 = vmatprep.subr.mxu1 %v544_v10  ;;  %v497_v10 = vld [vmem:[%s2150_s3 + $0x108] sm:$0xff] }
  0x43   : > { %1273 = vmatpush3.msra.mxu1 %v528_v11  ;;  %v512_v11 = vld [vmem:[%s2150_s3 + $0x180] sm:$0xff] }
  0xe4   : > { %v1316_v13 = vpop.f32.mrf.mxu1 }
  0xe5   : > { %v373_v14 = vadd.f32 %v1316_v13, %v1141_v12  ;;  %v575_v13 = vld [vmem:[%s2150_s3 + $0x378] sm:$0xff] }
  0xe6   : > { %v367_v15 = vpop.f32.mrf.mxu1 }
  0xe7   : > { %v377_v16 = vmax.f32 %v373_v14, 0.0  ;;  %v368_v17 = vadd.f32 %v1141_v12, %v367_v15  ;;  %v496_v12 = vld [vmem:[%s2150_s3 + $0x100] sm:$0xff]  ;;  %v574_v15 = vld [vmem:[%s2150_s3 + $0x370] sm:$0xff] }
  0xe9   : > { %422 = vst.msk [vmem:[#allocation2 + $0x50] sm:$0xff] %vm294_vm1, %v377_v16  ;;  %v425_v18 = vrot.slane %v377_v16, 1  ;;  %v434_v19 = vrot.slane %v377_v16, 2  ;;  %v443_v20 = vrot.slane %v377_v16, 3  ;;  %v376_v21 = vmax.f32 %v368_v17, 0.0  ;;  %v573_v17 = vld [vmem:[%s2150_s3 + $0x368] sm:$0xff] }
  0xea   : > { %v396_v22 = vrot.slane %v377_v16, 5  ;;  %v405_v23 = vrot.slane %v377_v16, 6  ;;  %v414_v24 = vrot.slane %v377_v16, 7 }
  0xeb   : > { %431 = vst.msk [vmem:[#allocation2 + $0x58] sm:$0x7f] %vm430_vm2, %v425_v18  ;;  %v395_v25 = vrot.slane %v376_v21, 5  ;;  %v404_v26 = vrot.slane %v376_v21, 6  ;;  %v413_v27 = vrot.slane %v376_v21, 7  ;;  %v424_v28 = vrot.slane %v376_v21, 1 }
  0xec   : > { %440 = vst.msk [vmem:[#allocation2 + $0x60] sm:$0x3f] %vm439_vm3, %v434_v19  ;;  %v433_v29 = vrot.slane %v376_v21, 2  ;;  %v442_v30 = vrot.slane %v376_v21, 3 }
  0xed   : > { %449 = vst.msk [vmem:[#allocation2 + $0x68] sm:$0x1f] %vm448_vm4, %v443_v20  ;;  %v397_v31 = vsel %vm394_vm5, %v395_v25, %v396_v22  ;;  %v406_v32 = vsel %vm403_vm7, %v404_v26, %v405_v23  ;;  %v415_v33 = vsel %vm412_vm9, %v413_v27, %v414_v24  ;;  %v426_v34 = vsel %vm423_vm11, %v424_v28, %v425_v18  ;;  %v570_v22 = vld [vmem:[%s2150_s3 + $0x350] sm:$0xff]  ;;  %v569_v23 = vld [vmem:[%s2150_s3 + $0x348] sm:$0xff]  ;;  %v568_v24 = vld [vmem:[%s2150_s3 + $0x340] sm:$0xff] }
  0xee   : > { %421 = vst.msk [vmem:[#allocation2 + $0x18] sm:$0xff] %vm294_vm1, %v376_v21  ;;  %402 = vst.msk [vmem:[#allocation2 + $0x38] sm:$0xff] %vm294_vm1, %v397_v31  ;;  %v435_v35 = vsel %vm432_vm12, %v433_v29, %v434_v19  ;;  %v444_v36 = vsel %vm441_vm13, %v442_v30, %v443_v20  ;;  %v572_v19 = vld [vmem:[%s2150_s3 + $0x360] sm:$0xff]  ;;  %v571_v21 = vld [vmem:[%s2150_s3 + $0x358] sm:$0xff] }
  0xef   : > { %401 = vst.msk [vmem:[#allocation2] sm:$0xf8] %vm400_vm6, %v395_v25  ;;  %v567_v25 = vld [vmem:[%s2150_s3 + $0x338] sm:$0xff]  ;;  %v564_v28 = vld [vmem:[%s2150_s3 + $0x320] sm:$0xff]  ;;  %v562_v30 = vld [vmem:[%s2150_s3 + $0x310] sm:$0xff] }
  0xf0   : > { %410 = vst.msk [vmem:[#allocation2 + $0x8] sm:$0xfc] %vm409_vm8, %v404_v26  ;;  %v460_v16 = vld [vmem:[#allocation2 + $0x50] sm:$0xff]  ;;  %v563_v29 = vld [vmem:[%s2150_s3 + $0x318] sm:$0xff]  ;;  %v561_v31 = vld [vmem:[%s2150_s3 + $0x308] sm:$0xff] }
  0xf1   : > { %419 = vst.msk [vmem:[#allocation2 + $0x10] sm:$0xfe] %vm418_vm10, %v413_v27  ;;  %v566_v26 = vld [vmem:[%s2150_s3 + $0x330] sm:$0xff]  ;;  %v565_v27 = vld [vmem:[%s2150_s3 + $0x328] sm:$0xff] }
  0xf2   : > { %411 = vst.msk [vmem:[#allocation2 + $0x40] sm:$0xff] %vm294_vm1, %v406_v32  ;;  %420 = vst.msk [vmem:[#allocation2 + $0x48] sm:$0xff] %vm294_vm1, %v415_v33  ;;  %v461_v52 = vld [vmem:[#allocation2 + $0x58] sm:$0xff]  ;;  %v560_v32 = vld [vmem:[%s2150_s3 + $0x300] sm:$0xff] }
  0xf3   : > { %429 = vst.msk [vmem:[#allocation2 + $0x20] sm:$0xff] %vm294_vm1, %v426_v34  ;;  %438 = vst.msk [vmem:[#allocation2 + $0x28] sm:$0xff] %vm294_vm1, %v435_v35  ;;  %v462_v46 = vld [vmem:[#allocation2 + $0x60] sm:$0xff]  ;;  %v930_v34 = vld [vmem:[%s2152_s5 + $0xf8] sm:$0xff] }
  0xf4   : > { %447 = vst.msk [vmem:[#allocation2 + $0x30] sm:$0xff] %vm294_vm1, %v444_v36  ;;  %v463_v33 = vld [vmem:[#allocation2 + $0x68] sm:$0xff]  ;;  %972 = vmatprep.subr.mxu1 %v930_v34  ;;  %v929_v35 = vld [vmem:[%s2152_s5 + $0xf0] sm:$0xff] }
  0xf5   : > { %v457_v48 = vld [vmem:[#allocation2 + $0x38] sm:$0xff]  ;;  %v928_v36 = vld [vmem:[%s2152_s5 + $0xe8] sm:$0xff] }
  0xf6   : > { %v450_v38 = vld [vmem:[#allocation2] sm:$0xff]  ;;  %v453_v50 = vld [vmem:[#allocation2 + $0x18] sm:$0xff] }
  0xf7   : > { %v451_v37 = vld [vmem:[#allocation2 + $0x8] sm:$0xff] }
  0xf8   : > { %647 = vmatprep.mubr.f32.mxu0 %v451_v37  ;;  %v452_v14 = vld [vmem:[#allocation2 + $0x10] sm:$0xff]  ;;  %v927_v37 = vld [vmem:[%s2152_s5 + $0xe0] sm:$0xff] }
  0xf9   : > { %v458_v40 = vld [vmem:[#allocation2 + $0x40] sm:$0xff]  ;;  %648 = vmatmul.mubr.f32.vlgmr.msra.gmra.mxu0 %v450_v38  ;;  %v459_v18 = vld [vmem:[#allocation2 + $0x48] sm:$0xff]  ;;  %v926_v38 = vld [vmem:[%s2152_s5 + $0xd8] sm:$0xff] }
  0xfa   : > { %v455_v42 = vld [vmem:[#allocation2 + $0x28] sm:$0xff]  ;;  %v454_v43 = vld [vmem:[#allocation2 + $0x20] sm:$0xff]  ;;  %1205 = vmatpush3.msra.mxu0 %v511_v39  ;;  %652 = vmatprep.mubr.f32.mxu0 %v458_v40  ;;  %v925_v39 = vld [vmem:[%s2152_s5 + $0xd0] sm:$0xff] }
  0xfb   : > { %797 = vmatprep.mubr.f32.mxu1 %v455_v42  ;;  %1206 = vmatprep.subr.mxu0 %v526_v41  ;;  %v456_v20 = vld [vmem:[#allocation2 + $0x30] sm:$0xff]  ;;  %v924_v40 = vld [vmem:[%s2152_s5 + $0xc8] sm:$0xff]  ;;  %v923_v41 = vld [vmem:[%s2152_s5 + $0xc0] sm:$0xff] }
  0xfc   : > { %798 = vmatmul.mubr.f32.vlgmr.msra.gmra.mxu1 %v454_v43  ;;  %1207 = vmatpush3.msra.mxu0 %v510_v44  ;;  %v922_v42 = vld [vmem:[%s2152_s5 + $0xb8] sm:$0xff]  ;;  %v921_v43 = vld [vmem:[%s2152_s5 + $0xb0] sm:$0xff]  ;;  %v920_v44 = vld [vmem:[%s2152_s5 + $0xa8] sm:$0xff] }
  0xfd   : > { %802 = vmatprep.mubr.f32.mxu1 %v462_v46  ;;  %1208 = vmatprep.subr.mxu0 %v525_v45  ;;  %v919_v45 = vld [vmem:[%s2152_s5 + $0xa0] sm:$0xff]  ;;  %v918_v46 = vld [vmem:[%s2152_s5 + $0x98] sm:$0xff] }
  0xfe   : > { %653 = vmatmul.mubr.f32.gmra.mxu0 %v457_v48  ;;  %973 = vmatpush1.msra.mxu1 %v929_v35  ;;  %v916_v48 = vld [vmem:[%s2152_s5 + $0x88] sm:$0xff] }
  0xff   : > { %1209 = vmatpush3.msra.mxu0 %v509_v47  ;;  %722 = vmatprep.mubr.f32.mxu0 %v453_v50  ;;  %v917_v47 = vld [vmem:[%s2152_s5 + $0x90] sm:$0xff]  ;;  %v914_v50 = vld [vmem:[%s2152_s5 + $0x78] sm:$0xff] }
 0x100   : > { %1210 = vmatprep.subr.mxu0 %v524_v49  ;;  %803 = vmatmul.mubr.f32.gmra.mxu1 %v461_v52  ;;  %v915_v49 = vld [vmem:[%s2152_s5 + $0x80] sm:$0xff]  ;;  %v912_v52 = vld [vmem:[%s2152_s5 + $0x68] sm:$0xff] }
 0x101   : > { %1211 = vmatpush3.msra.mxu0 %v508_v51  ;;  %974 = vmatprep.subr.mxu1 %v928_v36  ;;  %v913_v51 = vld [vmem:[%s2152_s5 + $0x70] sm:$0xff] }
 0x102   : > { %1212 = vmatprep.subr.mxu0 %v523_v53  ;;  %975 = vmatpush1.msra.mxu1 %v927_v37  ;;  %v911_v53 = vld [vmem:[%s2152_s5 + $0x60] sm:$0xff] }
 0x103   : > { %1213 = vmatpush3.msra.mxu0 %v507_v54  ;;  %976 = vmatprep.subr.mxu1 %v926_v38  ;;  %v910_v54 = vld [vmem:[%s2152_s5 + $0x58] sm:$0xff] }
 0x104   : > { %1214 = vmatprep.subr.mxu0 %v522_v55  ;;  %977 = vmatpush1.msra.mxu1 %v925_v39  ;;  %v909_v55 = vld [vmem:[%s2152_s5 + $0x50] sm:$0xff] }
 0x105   : > { %1215 = vmatpush3.msra.mxu0 %v506_v56  ;;  %978 = vmatprep.subr.mxu1 %v924_v40  ;;  %v908_v56 = vld [vmem:[%s2152_s5 + $0x48] sm:$0xff] }
 0x106   : > { %1216 = vmatprep.subr.mxu0 %v521_v57  ;;  %979 = vmatpush1.msra.mxu1 %v923_v41  ;;  %v907_v57 = vld [vmem:[%s2152_s5 + $0x40] sm:$0xff] }
 0x107   : > { %1217 = vmatpush3.msra.mxu0 %v505_v58  ;;  %980 = vmatprep.subr.mxu1 %v922_v42  ;;  %v906_v58 = vld [vmem:[%s2152_s5 + $0x38] sm:$0xff] }
 0x108   : > { %1218 = vmatprep.subr.mxu0 %v520_v59  ;;  %981 = vmatpush1.msra.mxu1 %v921_v43  ;;  %v905_v59 = vld [vmem:[%s2152_s5 + $0x30] sm:$0xff] }
 0x109   : > { %1219 = vmatpush3.msra.mxu0 %v504_v60  ;;  %982 = vmatprep.subr.mxu1 %v920_v44  ;;  %v904_v60 = vld [vmem:[%s2152_s5 + $0x28] sm:$0xff] }
 0x10a   : > { %1220 = vmatprep.subr.mxu0 %v519_v61  ;;  %983 = vmatpush1.msra.mxu1 %v919_v45  ;;  %v903_v61 = vld [vmem:[%s2152_s5 + $0x20] sm:$0xff] }
 0x10b   : > { %1221 = vmatpush3.msra.mxu0 %v503_v62  ;;  %984 = vmatprep.subr.mxu1 %v918_v46  ;;  %v902_v62 = vld [vmem:[%s2152_s5 + $0x18] sm:$0xff] }
 0x10c   : > { %1222 = vmatprep.subr.mxu0 %v518_v63  ;;  %985 = vmatpush1.msra.mxu1 %v917_v47  ;;  %v901_v63 = vld [vmem:[%s2152_s5 + $0x10] sm:$0xff] }
 0x10d   : > { %1223 = vmatpush3.msra.mxu0 %v502_v0  ;;  %986 = vmatprep.subr.mxu1 %v916_v48  ;;  %v900_v0 = vld [vmem:[%s2152_s5 + $0x8] sm:$0xff] }
 0x10e   : > { %1224 = vmatprep.subr.mxu0 %v517_v1  ;;  %987 = vmatpush1.msra.mxu1 %v915_v49  ;;  %v899_v1 = vld [vmem:[%s2152_s5] sm:$0xff] }
 0x10f   : > { %1225 = vmatpush3.msra.mxu0 %v501_v2  ;;  %988 = vmatprep.subr.mxu1 %v914_v50  ;;  %v946_v2 = vld [vmem:[%s2152_s5 + $0x178] sm:$0xf]  ;;  %v898_v50 = vld [vmem:[#allocation3 + $0x18] sm:$0xff] }
 0x110   : > { %1226 = vmatprep.subr.mxu0 %v516_v3  ;;  %989 = vmatpush1.msra.mxu1 %v913_v51  ;;  %v945_v3 = vld [vmem:[%s2152_s5 + $0x170] sm:$0xf] }
 0x111   : > { %1227 = vmatpush3.msra.mxu0 %v500_v4  ;;  %990 = vmatprep.subr.mxu1 %v912_v52  ;;  %v944_v4 = vld [vmem:[%s2152_s5 + $0x168] sm:$0xff] }
 0x112   : > { %1228 = vmatprep.subr.mxu0 %v515_v5  ;;  %991 = vmatpush1.msra.mxu1 %v911_v53  ;;  %v943_v5 = vld [vmem:[%s2152_s5 + $0x160] sm:$0xff]  ;;  %v949_v53 = vlaneseq }
 0x113   : > { %1229 = vmatpush3.msra.mxu0 %v499_v6  ;;  %992 = vmatprep.subr.mxu1 %v910_v54  ;;  %v942_v6 = vld [vmem:[%s2152_s5 + $0x158] sm:$0xff] }
 0x114   : > { %1230 = vmatprep.subr.mxu0 %v514_v7  ;;  %993 = vmatpush1.msra.mxu1 %v909_v55  ;;  %v941_v7 = vld [vmem:[%s2152_s5 + $0x150] sm:$0xff]  ;;  %v950_v54 = vshrl.u32 %v949_v53, 7 }
 0x115   : > { %1231 = vmatpush3.msra.mxu0 %v498_v8  ;;  %994 = vmatprep.subr.mxu1 %v908_v56  ;;  %v940_v8 = vld [vmem:[%s2152_s5 + $0x148] sm:$0xff]  ;;  %v947_v56 = vld [vmem:[%s2153_s6] sm:$0x3] }
 0x116   : > { %1232 = vmatprep.subr.mxu0 %v513_v9  ;;  %995 = vmatpush1.msra.mxu1 %v907_v57  ;;  %v939_v9 = vld [vmem:[%s2152_s5 + $0x140] sm:$0xff]  ;;  %v951_v55 = vsub.s32 0, %v950_v54  ;;  %v955_v57 = vsub.s32 1, %v950_v54 }
 0x117   : > { %1233 = vmatpush3.msra.mxu0 %v497_v10  ;;  %996 = vmatprep.subr.mxu1 %v906_v58  ;;  %v938_v10 = vld [vmem:[%s2152_s5 + $0x138] sm:$0xff] }
 0x118   : > { %1234 = vmatprep.subr.mxu0 %v512_v11  ;;  %997 = vmatpush1.msra.mxu1 %v905_v59  ;;  %v937_v11 = vld [vmem:[%s2152_s5 + $0x130] sm:$0xff]  ;;  %v952_v58 = vrot.slane %v947_v56, %v951_v55  ;;  %v956_v59 = vrot.slane %v947_v56, %v955_v57 }
 0x119   : > { %1235 = vmatpush3.msra.mxu0 %v496_v12  ;;  %998 = vmatprep.subr.mxu1 %v904_v60  ;;  %v936_v12 = vld [vmem:[%s2152_s5 + $0x128] sm:$0xff] }
 0x11a   : > { %723 = vmatmul.mubr.f32.vlgmr.msra.gmra.mxu0 %v452_v14  ;;  %1317 = vmatprep.subr.mxu0 %v575_v13  ;;  %v934_v14 = vld [vmem:[%s2152_s5 + $0x118] sm:$0xff] }
 0x11b   : > { %727 = vmatprep.mubr.f32.mxu0 %v460_v16  ;;  %1318 = vmatpush3.msra.mxu0 %v575_v13  ;;  %v935_v13 = vld [vmem:[%s2152_s5 + $0x120] sm:$0xff]  ;;  %v896_v16 = vld [vmem:[#allocation3 + $0x8] sm:$0xff] }
 0x11c   : > { %1319 = vmatprep.subr.mxu0 %v574_v15  ;;  %999 = vmatpush1.msra.mxu1 %v903_v61 }
 0x11d   : > { %1320 = vmatpush3.msra.mxu0 %v574_v15  ;;  %1000 = vmatprep.subr.mxu1 %v902_v62  ;;  %v933_v15 = vld [vmem:[%s2152_s5 + $0x110] sm:$0xff] }
 0x11e   : > { %728 = vmatmul.mubr.f32.gmra.mxu0 %v459_v18  ;;  %1321 = vmatprep.subr.mxu0 %v573_v17  ;;  %v931_v18 = vld [vmem:[%s2152_s5 + $0x100] sm:$0xff] }
 0x11f   : > { %1322 = vmatpush3.msra.mxu0 %v573_v17  ;;  %1349 = vmatprep.mubr.f32.mxu0 %v456_v20  ;;  %v932_v17 = vld [vmem:[%s2152_s5 + $0x108] sm:$0xff] }
 0x120   : > { %1323 = vmatprep.subr.mxu0 %v572_v19  ;;  %1001 = vmatpush1.msra.mxu1 %v901_v63 }
 0x121   : > { %1324 = vmatpush3.msra.mxu0 %v572_v19  ;;  %1002 = vmatprep.subr.mxu1 %v900_v0 }
 0x122   : > { %1325 = vmatprep.subr.mxu0 %v571_v21  ;;  %1003 = vmatpush1.msra.mxu1 %v899_v1 }
 0x123   : > { %1326 = vmatpush3.msra.mxu0 %v571_v21  ;;  %1145 = vmatprep.subr.msk.mxu1 %vm965_vm14, %v946_v2 }
 0x124   : > { %1327 = vmatprep.subr.mxu0 %v570_v22  ;;  %1146 = vmatpush2.msk.msra.mxu1 %vm965_vm14, %v945_v3 }
 0x125   : > { %1328 = vmatpush3.msra.mxu0 %v570_v22  ;;  %1022 = vmatprep.subr.mxu1 %v944_v4 }
 0x126   : > { %1329 = vmatprep.subr.mxu0 %v569_v23  ;;  %1023 = vmatpush2.msra.mxu1 %v943_v5 }
 0x127   : > { %1330 = vmatpush3.msra.mxu0 %v569_v23  ;;  %1024 = vmatprep.subr.mxu1 %v942_v6 }
 0x128   : > { %1331 = vmatprep.subr.mxu0 %v568_v24  ;;  %1025 = vmatpush2.msra.mxu1 %v941_v7 }
 0x129   : > { %1332 = vmatpush3.msra.mxu0 %v568_v24  ;;  %1026 = vmatprep.subr.mxu1 %v940_v8 }
 0x12a   : > { %1333 = vmatprep.subr.mxu0 %v567_v25  ;;  %1027 = vmatpush2.msra.mxu1 %v939_v9 }
 0x12b   : > { %1334 = vmatpush3.msra.mxu0 %v567_v25  ;;  %1028 = vmatprep.subr.mxu1 %v938_v10 }
 0x12c   : > { %1335 = vmatprep.subr.mxu0 %v566_v26  ;;  %1029 = vmatpush2.msra.mxu1 %v937_v11 }
 0x12d   : > { %1336 = vmatpush3.msra.mxu0 %v566_v26  ;;  %1030 = vmatprep.subr.mxu1 %v936_v12 }
 0x12e   : > { %1337 = vmatprep.subr.mxu0 %v565_v27  ;;  %1031 = vmatpush2.msra.mxu1 %v935_v13 }
 0x12f   : > { %1338 = vmatpush3.msra.mxu0 %v565_v27  ;;  %1147 = vmatprep.mubr.msk.f32.mxu1 %vm886_vm0, %v896_v16 }
 0x130   : > { %1339 = vmatprep.subr.mxu0 %v564_v28  ;;  %1032 = vmatprep.subr.mxu1 %v934_v14 }
 0x131   : > { %1340 = vmatpush3.msra.mxu0 %v564_v28  ;;  %1033 = vmatpush2.msra.mxu1 %v933_v15 }
 0x132   : > { %1341 = vmatprep.subr.mxu0 %v563_v29  ;;  %1034 = vmatprep.subr.mxu1 %v932_v17 }
 0x133   : > { %1342 = vmatpush3.msra.mxu0 %v563_v29  ;;  %1035 = vmatpush2.msra.mxu1 %v931_v18 }
 0x134   : > { %1343 = vmatprep.subr.mxu0 %v562_v30 }
 0x135   : > { %1344 = vmatpush3.msra.mxu0 %v562_v30 }
 0x136   : > { %1345 = vmatprep.subr.mxu0 %v561_v31 }
 0x137   : > { %1346 = vmatpush3.msra.mxu0 %v561_v31 }
 0x138   : > { %1347 = vmatprep.subr.mxu0 %v560_v32 }
 0x139   : > { %1348 = vmatpush3.msra.mxu0 %v560_v32 }
 0x13a   : > { %1350 = vmatmul.mubr.f32.vlgmr.msra.gmra.mxu0 %v463_v33  ;;  %v1144_v33 = vld [vmem:[%s2151_s4] ss:$0 sm:$0xff] }
 0x1b9   : > { %v1198_v19 = vpop.f32.mrf.mxu0 }
 0x1bb   : > { %v1199_v20 = vpop.f32.mrf.mxu0 }
 0x1bc   : > { %v1274_v25 = vpop.f32.mrf.mxu1  ;;  %v1200_v31 = vadd.f32 %v1199_v20, %v1198_v19 }
 0x1be   : > { %v1201_v21 = vpop.f32.mrf.mxu0  ;;  %v1275_v27 = vpop.f32.mrf.mxu1  ;;  %v650_v37 = vadd.f32 %v1200_v31, %v1144_v33 }
 0x1bf   : > { %v1276_v41 = vadd.f32 %v1275_v27, %v1274_v25 }
 0x1c0   : > { %v1202_v22 = vpop.f32.mrf.mxu0  ;;  %v1277_v30 = vpop.f32.mrf.mxu1 }
 0x1c1   : > { %v1203_v29 = vadd.f32 %v1202_v22, %v1201_v21 }
 0x1c2   : > { %v1278_v36 = vpop.f32.mrf.mxu1 }
 0x1c3   : > { %v655_v34 = vadd.f32 %v1203_v29, %v1144_v33  ;;  %v1279_v39 = vadd.f32 %v1278_v36, %v1277_v30 }
 0x1da   : > { %v1236_v23 = vpop.f32.mrf.mxu0 }
 0x1dc   : > { %v1237_v24 = vpop.f32.mrf.mxu0 }
 0x1dd   : > { %v1238_v35 = vadd.f32 %v1237_v24, %v1236_v23 }
 0x1de   : > { %v1239_v26 = vpop.f32.mrf.mxu0 }
 0x1df   : > { %v725_v40 = vadd.f32 %v1238_v35, %v650_v37 }
 0x1e0   : > { %v1240_v28 = vpop.f32.mrf.mxu0 }
 0x1e1   : > { %v1241_v32 = vadd.f32 %v1240_v28, %v1239_v26  ;;  %v800_v45 = vadd.f32 %v1276_v41, %v725_v40 }
 0x1e3   : > { %v730_v38 = vadd.f32 %v1241_v32, %v655_v34 }
 0x1e5   : > { %v805_v42 = vadd.f32 %v1279_v39, %v730_v38 }
 0x1fa   : > { %v1351_v43 = vpop.f32.mrf.mxu0 }
 0x1fb   : > { %v880_v44 = vadd.f32 %v1351_v43, %v805_v42 }
 0x1fc   : > { %v874_v46 = vpop.f32.mrf.mxu0 }
 0x1fd   : > { %v884_v47 = vmax.f32 %v880_v44, 0.0  ;;  %v875_v48 = vadd.f32 %v874_v46, %v800_v45 }
 0x1ff   : > { %892 = vst.msk [vmem:[#allocation3 + $0x10] sm:$0xff] %vm890_vm15, %v884_v47  ;;  %v883_v49 = vmax.f32 %v875_v48, 0.0 }
 0x201   : > { %891 = vst.msk [vmem:[#allocation3] sm:$0xff] %vm890_vm15, %v883_v49 }
 0x206   : > { %v897_v52 = vld [vmem:[#allocation3 + $0x10] sm:$0xff] }
 0x208   : > { %v895_v51 = vld [vmem:[#allocation3] sm:$0xff] }
 0x209   : > { %1037 = vmatmul.mubr.f32.vlgmr.msra.gmra.mxu1 %v895_v51 }
 0x20a   : > { %1148 = vmatprep.mubr.msk.f32.mxu1 %vm886_vm0, %v898_v50  ;;  %vm1054_vm0 = vcmask 916480  }
 0x20d   : > { %1043 = vmatmul.mubr.f32.gmra.mxu1 %v897_v52 }
 0x2c9   : > { %v1038_v60 = vpop.f32.mrf.mxu1 }
 0x2ca   : > { %v1039_v61 = vadd.f32 %v1038_v60, %v952_v58 }
 0x2cb   : > { %v1040_v62 = vpop.f32.mrf.mxu1 }
 0x2cc   : > { %v1049_v63 = vmax.f32 %v1039_v61, 0.0  ;;  %v1041_v0 = vadd.f32 %v1040_v62, %v956_v59 }
 0x2cd   : > { %v1044_v1 = vpop.f32.mrf.mxu1 }
 0x2ce   : > { %1053 = vst [vmem:[%s271_s9] sm:$0xff] %v1049_v63  ;;  %v1050_v2 = vmax.f32 %v1041_v0, 0.0  ;;  %v1045_v3 = vadd.f32 %v1044_v1, %v952_v58 }
 0x2cf   : > { %v1046_v4 = vpop.f32.mrf.mxu1 }
 0x2d0   : > { %1055 = vst.msk [vmem:[%s271_s9 + $0x8] sm:$0xff] %vm1054_vm0, %v1050_v2  ;;  %v1051_v5 = vmax.f32 %v1045_v3, 0.0  ;;  %v1047_v6 = vadd.f32 %v1046_v4, %v956_v59 }
 0x2d2   : > { %1056 = vst [vmem:[%s271_s9 + $0x10] sm:$0xff] %v1051_v5  ;;  %v1052_v7 = vmax.f32 %v1047_v6, 0.0 }
 0x2d4   : > { %1057 = vst.msk [vmem:[%s271_s9 + $0x18] sm:$0xff] %vm1054_vm0, %v1052_v7 }
 0x2d5   : > { %1407 = shalt.err (!%p1404_p3)
}
 0x2d6   : > { %s1408_s23 = scalar_lea.hbm %s2104_s17, 512  ;;  %s1412_s8 = scalar_lea.hbm %s2154_s7, 1024 }
 0x2d7   : > { %p1409_p4 = scmp.ne.s32.totalorder %s2104_s17, %s1408_s23  ;;  %p1413_p9 = scmp.lt.s32.totalorder %s2104_s17, %s2154_s7 }
 0x2d8   : > { %p1414_p10 = scmp.lt.s32.totalorder %s1412_s8, %s1408_s23 }
 0x2d9   : > { %p1410_p7 = pnand %p1409_p4, %p1538_p5 }
 0x2da   : > { %p1415_p11 = por %p1414_p10, %p1413_p9 }
 0x2db   : > { %p1411_p8 = pneg %p1410_p7 }
 0x2dd   : > { %p1416_p12 = pnand %p1415_p11, %p1411_p8 }
 0x2df   : > { %1419 = shalt.err (!%p1416_p12)
}
 0x2e0   : > { %s1458_s15 = smov 256   ;;  %s1459_s16 = smov 16  }
 0x2e1   : > { %1352 = dma.vmem_to_hbm [thread:$0]  (%p1538_p5), %s2099_s13, 512, %s2104_s17, %s2107_s28, %s1458_s15, %s1458_s15, %s1459_s16  }
 0x2e2 PF: > { %p1358_p13 = scmp.ge.s32.totalorder %s1454_s27, 2  ;;  %s1087_s18 = sand.u32 1, %s1442_s24  }
 0x2e3   : > { %s1088_s20 = scalar_lea.sflag [#allocation5], %s1087_s18 }
 0x2e4   : > { %p1355_p0 = pnand %p1358_p13, %p1542_p6 }
 0x2e6   : > { %p1356_p1 = pneg %p1355_p0 }
 0x2e8   : > { %1437 = dma.done.wait (%p1356_p1), %s1088_s20, 512  }
 0x2e9   : > { %1439 = vsyncadd (%p1356_p1), %s1088_s20, 4294966784  ;;  %p17_p2 = scmp.ge.s32.totalorder %s1525_s30, 4   ;;  %s2157_s24 = smov %s1446_s25 }
 0x2ea   : > { %s2158_s25 = smov %s1450_s26  ;;  %s2159_s26 = smov %s1536_s10 }
 0x2eb   : > { %s2160_s27 = smov %s1525_s30  ;;  %19 = sbr.rel (!%p17_p2) target bundleno = 3 (0x3), region = 83 }
 0x2f0   :  { %1093 = vsyncpa [#allocation5], 1 }
 0x2f1   :  { %1095 = vsyncpa [#allocation5 + $0x1], 1 }

</bundles_post_ra>
